<compile_context>
chip_gen: v6e
topology: v6e:2x2x1
jax: 0.10.0
libtpu: 0.0.40
codegen_flags: <defaults>
</compile_context>

<pallas_src>
import jax
import jax.numpy as jnp
from jax.experimental import pallas as pl
from jax.experimental.pallas import tpu as pltpu

LANE = 128
DEFAULT_TM = 8192          # rows of 128 elems per grid step (4 MiB per f32 buffer)
NUM_CORE_SPLITS = 2        # leading "parallel" axis (both TCs on v7x; no-op on 1-TC chips)
SMALL_INPUT_ELEMS = 64 * 1024   # below this, skip Pallas entirely (fast path)


def _make_loss_kernel(tm, m_total, inner, acc_rows, any_partial):
    """Reduction kernel over a (m_total, 128) slab tiled by tm rows.

    Grid = (ncores, inner); block index = c * inner + i (clamped in the
    index_map).  Emits one raw partial sum of (x-1)^4 per core.
    """

    def accumulate(acc_ref, v):
        if acc_rows == tm:
            acc_ref[...] += v
        else:
            # Fold the tile into the (8, 128) accumulator: pure VALU adds.
            acc_ref[...] += v.reshape(tm // acc_rows, acc_rows, LANE).sum(axis=0)

    def kernel(x_ref, o_ref, acc_ref):
        c = pl.program_id(0)
        i = pl.program_id(1)

        @pl.when(i == 0)
        def _():
            acc_ref[...] = jnp.zeros_like(acc_ref)

        d = x_ref[...].astype(jnp.float32) - 1.0
        d2 = d * d
        d4 = d2 * d2

        if any_partial:
            blk = c * inner + i
            is_partial = (blk + 1) * tm > m_total

            @pl.when(is_partial)
            def _():
                # Zero rows past the true extent (true tail block, or a
                # duplicated/clamped block on the last core).
                base = blk * tm
                row = jax.lax.broadcasted_iota(jnp.int32, (tm, LANE), 0) + base
                accumulate(acc_ref, jnp.where(row < m_total, d4, 0.0))

            @pl.when(jnp.logical_not(is_partial))
            def _():
                accumulate(acc_ref, d4)
        else:
            accumulate(acc_ref, d4)

        @pl.when(i == pl.num_programs(1) - 1)
        def _():
            # One cross-lane/sublane reduce per core.
            o_ref[0, 0] = jnp.sum(acc_ref[...])

    return kernel


def _lsgan_generator_loss(x, *, tm=DEFAULT_TM, min_pallas_elems=SMALL_INPUT_ELEMS):
    """sqrt(sum((x - 1)^4)) over all elements of x (streaming Pallas reduction)."""
    flat = x.reshape(-1)
    n = int(flat.shape[0])

    if n == 0:
        return jnp.float32(0.0)

    # Fast path: tiny inputs are dominated by launch + DMA latency.
    if n < min_pallas_elems:
        d = flat.astype(jnp.float32) - 1.0
        return jnp.sqrt(jnp.sum((d * d) * (d * d)))

    m = n // LANE
    n_aligned = m * LANE
    x2d = flat[:n_aligned].reshape(m, LANE)   # native dtype, lane-dense slab

    # Ragged (<128 elem) tail handled with a tiny plain-JAX reduce.
    if n_aligned < n:
        dt = flat[n_aligned:].astype(jnp.float32) - 1.0
        tail_sum = jnp.sum((dt * dt) * (dt * dt))
    else:
        tail_sum = jnp.float32(0.0)

    if m == 0:
        return jnp.sqrt(tail_sum)

    itemsize = int(jnp.dtype(x.dtype).itemsize)
    sublane = {1: 32, 2: 16, 4: 8}.get(itemsize, 8)   # min sublane tile per dtype

    if m <= tm:
        tm = m                                   # full extent: any tm is legal
    else:
        tm = max(sublane, (tm // sublane) * sublane)

    nb = pl.cdiv(m, tm)                          # number of row blocks
    ncores = NUM_CORE_SPLITS if nb >= NUM_CORE_SPLITS else 1
    inner = pl.cdiv(nb, ncores)

    any_partial = (m % tm != 0) or (inner * ncores != nb)
    acc_rows = 8 if (tm % 8 == 0) else tm        # (8,128) accumulator when possible
    nb_last = nb - 1

    cost = pl.CostEstimate(
        flops=4 * n,                              # sub, mul, mul, add per element
        transcendentals=0,                        # sqrt happens in the wrapper
        bytes_accessed=itemsize * n_aligned + 4 * ncores,
    )

    partials = pl.pallas_call(
        _make_loss_kernel(tm, m, inner, acc_rows, any_partial),
        out_shape=jax.ShapeDtypeStruct((ncores, 1), jnp.float32),
        grid_spec=pltpu.PrefetchScalarGridSpec(
            num_scalar_prefetch=0,
            grid=(ncores, inner),
            in_specs=[
                pl.BlockSpec(
                    (tm, LANE),
                    # Clamp block indices past the extent; their contribution is
                    # masked to zero inside the kernel.
                    lambda c, i: (jnp.minimum(c * inner + i, nb_last), 0),
                )
            ],
            out_specs=pl.BlockSpec(
                (1, 1), lambda c, i: (c, 0), memory_space=pltpu.MemorySpace.SMEM
            ),
            scratch_shapes=[pltpu.VMEM((acc_rows, LANE), jnp.float32)],
        ),
        compiler_params=pltpu.CompilerParams(
            # Leading split across TensorCores (v7x); trailing sequential reduction.
            dimension_semantics=("parallel", "arbitrary"),
        ),
        cost_estimate=cost,
    )(x2d)

    return jnp.sqrt(jnp.sum(partials) + tail_sum)


def generator_criterion(input, label, gf, gb, df, db):
    """JAX/Pallas equivalent of GeneratorCriterion.forward.

    `label, gf, gb, df, db` are unused (as in the reference). The reference
    evaluates the same expression twice on identical data; we compute it once
    and return the (identical) value twice.
    """
    del label, gf, gb, df, db  # unused by the reference forward
    loss = _lsgan_generator_loss(input)
    return loss, loss


def _ref_loss(v):
    d = v.astype(jnp.float32) - 1.0
    return jnp.sqrt(jnp.sum((d * d) * (d * d)))


if __name__ == "__main__":
    key = jax.random.PRNGKey(0)
    k1, k2, k3, k4, k5, k6, k7, k8, k9 = jax.random.split(key, 9)

    # Small shapes consistent with a GAN discriminator-output / feature setup.
    x = jax.random.normal(k1, (2, 4, 16, 16), dtype=jnp.float32)      # "output"
    label = jnp.ones((2, 4, 16, 16), dtype=jnp.float32)               # unused
    gf = jax.random.normal(k3, (2, 8, 8, 8), dtype=jnp.float32)       # unused
    gb = jax.random.normal(k4, (2, 8, 8, 8), dtype=jnp.float32)       # unused
    df = jax.random.normal(k5, (2, 8, 8, 8), dtype=jnp.float32)       # unused
    db = jax.random.normal(k6, (2, 8, 8, 8), dtype=jnp.float32)       # unused

    # 1) Module-level call (small input -> fast path).
    loss_a, loss_b = generator_criterion(x, label, gf, gb, df, db)
    loss_a = jax.block_until_ready(loss_a)
    loss_b = jax.block_until_ready(loss_b)
    ref = _ref_loss(x)
    assert jnp.allclose(loss_a, ref, rtol=1e-5, atol=1e-5), (loss_a, ref)
    assert jnp.allclose(loss_b, ref, rtol=1e-5, atol=1e-5), (loss_b, ref)

    # 2) Module-level call large enough to take the Pallas path (default tiling).
    x_big = jax.random.normal(k7, (2, 1, 256, 256), dtype=jnp.float32)  # 131072 elems
    big_a, _ = generator_criterion(x_big, None, None, None, None, None)
    big_a = jax.block_until_ready(big_a)
    assert jnp.allclose(big_a, _ref_loss(x_big), rtol=1e-5, atol=1e-5)

    # 3) Pallas path with multi-block grid, partial + clamped/duplicated blocks (f32).
    x1 = jax.random.normal(k8, (2, 4, 64, 64), dtype=jnp.float32)       # 32768 elems
    got1 = jax.block_until_ready(_lsgan_generator_loss(x1, tm=96, min_pallas_elems=0))
    assert jnp.allclose(got1, _ref_loss(x1), rtol=1e-5, atol=1e-5)

    # 4) Pallas path streaming native bf16 with a masked tail block and a <128
    #    ragged tail handled in the wrapper.
    x2 = jax.random.normal(k9, (3, 10, 16, 17), dtype=jnp.bfloat16)     # 8160 elems
    got2 = jax.block_until_ready(_lsgan_generator_loss(x2, tm=16, min_pallas_elems=0))
    assert jnp.allclose(got2, _ref_loss(x2), rtol=2e-2, atol=2e-2)

    print("KERNEL_OK")
</pallas_src>

<mosaic_0001>
module attributes {stable_mosaic.version = 11 : i64} {
  func.func @kernel(%arg0: i32, %arg1: i32, %arg2: memref<1024x128xf32, #tpu.memory_space<vmem>>, %arg3: memref<1x1xf32, #tpu.memory_space<smem>>, %arg4: memref<8x128xf32, #tpu.memory_space<vmem>>) attributes {dimension_semantics = [#tpu.dimension_semantics<parallel>, #tpu.dimension_semantics<arbitrary>], iteration_bounds = array<i64: 1, 1>, scalar_prefetch = 0 : i64, scratch_operands = 1 : i64, tpu.core_type = #tpu.core_type<tc>, window_params = [{transform_indices = @transform_0, window_bounds = array<i64: 1024, 128>}, {transform_indices = @transform_1, window_bounds = array<i64: 1, 1>}]} {
    %c0_i32 = arith.constant 0 : i32
    %0 = arith.cmpi eq, %arg1, %c0_i32 : i32
    %1 = arith.extui %0 : i1 to i32
    %c0_i32_0 = arith.constant 0 : i32
    %2 = arith.cmpi ne, %1, %c0_i32_0 : i32
    scf.if %2 {
      %cst_9 = arith.constant 0.000000e+00 : f32
      %16 = vector.broadcast %cst_9 : f32 to vector<8x128xf32>
      %c0_10 = arith.constant 0 : index
      %c0_11 = arith.constant 0 : index
      %17 = vector.load %arg4[%c0_10, %c0_11] : memref<8x128xf32, #tpu.memory_space<vmem>>, vector<8x128xf32>
      tpu.vector_store %arg4[%c0_10, %c0_11], %16 {strides = array<i32>} : memref<8x128xf32, #tpu.memory_space<vmem>>, vector<8x128xf32>,
    } else {
    }
    %c0 = arith.constant 0 : index
    %c0_1 = arith.constant 0 : index
    %3 = vector.load %arg2[%c0, %c0_1] : memref<1024x128xf32, #tpu.memory_space<vmem>>, vector<1024x128xf32>
    %cst = arith.constant 1.000000e+00 : f32
    %4 = vector.broadcast %cst : f32 to vector<1024x128xf32>
    %5 = arith.subf %3, %4 : vector<1024x128xf32>
    %6 = arith.mulf %5, %5 : vector<1024x128xf32>
    %7 = arith.mulf %6, %6 : vector<1024x128xf32>
    %c0_2 = arith.constant 0 : index
    %c0_3 = arith.constant 0 : index
    %8 = vector.load %arg4[%c0_2, %c0_3] : memref<8x128xf32, #tpu.memory_space<vmem>>, vector<8x128xf32>
    %9 = vector.shape_cast %7 : vector<1024x128xf32> to vector<128x8x128xf32>
    %cst_4 = arith.constant dense<0.000000e+00> : vector<8x128xf32>
    %10 = vector.multi_reduction <add>, %9, %cst_4 [0] : vector<128x8x128xf32> to vector<8x128xf32>
    %11 = arith.addf %8, %10 : vector<8x128xf32>
    %c0_5 = arith.constant 0 : index
    %c0_6 = arith.constant 0 : index
    %12 = vector.load %arg4[%c0_5, %c0_6] : memref<8x128xf32, #tpu.memory_space<vmem>>, vector<8x128xf32>
    tpu.vector_store %arg4[%c0_5, %c0_6], %11 {strides = array<i32>} : memref<8x128xf32, #tpu.memory_space<vmem>>, vector<8x128xf32>,
    %c0_i32_7 = arith.constant 0 : i32
    %13 = arith.cmpi eq, %arg1, %c0_i32_7 : i32
    %14 = arith.extui %13 : i1 to i32
    %c0_i32_8 = arith.constant 0 : i32
    %15 = arith.cmpi ne, %14, %c0_i32_8 : i32
    scf.if %15 {
      %c0_9 = arith.constant 0 : index
      %c0_10 = arith.constant 0 : index
      %16 = vector.load %arg4[%c0_9, %c0_10] : memref<8x128xf32, #tpu.memory_space<vmem>>, vector<8x128xf32>
      %17 = vector.shape_cast %16 : vector<8x128xf32> to vector<1x8x128xf32>
      %cst_11 = arith.constant dense<0.000000e+00> : vector<1xf32>
      %18 = vector.multi_reduction <add>, %17, %cst_11 [1, 2] : vector<1x8x128xf32> to vector<1xf32>
      %19 = vector.shape_cast %18 : vector<1xf32> to vector<1x1x1xf32>
      %20 = vector.extract %19[0, 0, 0] : f32 from vector<1x1x1xf32>
      %c0_12 = arith.constant 0 : index
      %c0_13 = arith.constant 0 : index
      %21 = memref.load %arg3[%c0_12, %c0_13] : memref<1x1xf32, #tpu.memory_space<smem>>
      memref.store %20, %arg3[%c0_12, %c0_13] : memref<1x1xf32, #tpu.memory_space<smem>>
    } else {
    }
    return
  }
  func.func @transform_0(%arg0: i32, %arg1: i32) -> (i32, i32) {
    %c1_i32 = arith.constant 1 : i32
    %0 = arith.muli %arg0, %c1_i32 : i32
    %1 = arith.addi %0, %arg1 : i32
    %c0_i32 = arith.constant 0 : i32
    %2 = arith.minsi %1, %c0_i32 : i32
    %c0_i32_0 = arith.constant 0 : i32
    %c0_i32_1 = arith.constant 0 : i32
    return %2, %c0_i32_0 : i32, i32
  }
  func.func @transform_1(%arg0: i32, %arg1: i32) -> (i32, i32) {
    %c0_i32 = arith.constant 0 : i32
    %c0_i32_0 = arith.constant 0 : i32
    return %arg0, %c0_i32 : i32, i32
  }
}

</mosaic_0001>

<bundles_post_ra>
// kernel: tpu_custom_call.1
= control target key start
LH: loop header
LB: loop body
LE: loop exit
PB: predicated region body
PF: predicated region fallthrough
CT: control target
= control target key end

     0   :  { %6 = vsyncpa [#allocation4], 0  ;;  %s897_s0 = inlined_call_operand.hbm [shape: f32[1024,128], index: 0, kind: input, shape index: {}]   ;;  %s898_s1 = inlined_call_operand.hbm [shape: f32[1,1], index: 1, kind: output, shape index: {}]  }
   0x1   :  { %7 = vsyncpa [#allocation5], 0  ;;  %s877_s6 = smov [#allocation3]  }
   0x2   :  { %s19_s7 = sshll.u32 %s877_s6, 4  ;;  %s20_s7 = int_to_ptr.vmem [resolvable:$true] %s19_s7 }
   0x3   :  { %s853_s8 = scalar_lea.vmem %s20_s7, 16384  ;;  %p858_p1 = scmp.lt.s32.totalorder %s20_s7, %s20_s7 }
   0x4   :  { %p854_p0 = scmp.ne.s32.totalorder %s20_s7, %s853_s8  ;;  %p859_p2 = scmp.lt.s32.totalorder %s853_s8, %s853_s8 }
   0x6   :  { %p860_p3 = por %p859_p2, %p858_p1 }
   0x8   :  { %p861_p4 = pnand %p860_p3, %p854_p0 }
   0xa   :  { %864 = shalt.err (!%p861_p4)
}
   0xb   :  { %s878_s9 = smov 128   ;;  %s879_s10 = smov 8  }
   0xc   :  { %25 = dma.hbm_to_vmem [thread:$0]  %s897_s0, 16384, %s20_s7, [#allocation4], %s878_s9, %s878_s9, %s879_s10  }
   0xd   :  { %873 = dma.done.wait [#allocation4], 16384  }
   0xe   :  { %874 = vsyncadd [#allocation4], 4294950912  ;;  %v38_v0 = vld [vmem:[#allocation3] sm:$0xff]  ;;  %v39_v1 = vld [vmem:[#allocation3 + $0x8] sm:$0xff]  ;;  %s880_s13 = smov [#allocation6]  }
   0xf   :  { %v40_v2 = vld [vmem:[#allocation3 + $0x10] sm:$0xff]  ;;  %v711_v3 = vadd.f32 -1.0, %v38_v0  ;;  %v712_v4 = vadd.f32 -1.0, %v39_v1  ;;  %v41_v5 = vld [vmem:[#allocation3 + $0x18] sm:$0xff]  ;;  %v42_v7 = vld [vmem:[#allocation3 + $0x20] sm:$0xff] }
  0x10   :  { %v713_v6 = vadd.f32 -1.0, %v40_v2  ;;  %v714_v8 = vadd.f32 -1.0, %v41_v5  ;;  %v43_v11 = vld [vmem:[#allocation3 + $0x28] sm:$0xff]  ;;  %v715_v12 = vadd.f32 -1.0, %v42_v7  ;;  %v44_v14 = vld [vmem:[#allocation3 + $0x30] sm:$0xff]  ;;  %v45_v19 = vld [vmem:[#allocation3 + $0x38] sm:$0xff] }
  0x11   :  { %v294_v9 = vmul.f32 %v711_v3, %v711_v3  ;;  %v295_v10 = vmul.f32 %v712_v4, %v712_v4  ;;  %v716_v15 = vadd.f32 -1.0, %v43_v11  ;;  %v717_v20 = vadd.f32 -1.0, %v44_v14  ;;  %v46_v23 = vld [vmem:[#allocation3 + $0x40] sm:$0xff]  ;;  %v47_v28 = vld [vmem:[#allocation3 + $0x48] sm:$0xff]  ;;  %v48_v33 = vld [vmem:[#allocation3 + $0x50] sm:$0xff] }
  0x12   :  { %v296_v13 = vmul.f32 %v713_v6, %v713_v6  ;;  %v297_v16 = vmul.f32 %v714_v8, %v714_v8  ;;  %v298_v21 = vmul.f32 %v715_v12, %v715_v12  ;;  %v718_v24 = vadd.f32 -1.0, %v45_v19  ;;  %v49_v38 = vld [vmem:[#allocation3 + $0x58] sm:$0xff]  ;;  %v50_v43 = vld [vmem:[#allocation3 + $0x60] sm:$0xff]  ;;  %v51_v48 = vld [vmem:[#allocation3 + $0x68] sm:$0xff] }
  0x13   :  { %v422_v17 = vmul.f32 %v294_v9, %v294_v9  ;;  %v423_v18 = vmul.f32 %v295_v10, %v295_v10  ;;  %v299_v25 = vmul.f32 %v716_v15, %v716_v15  ;;  %v719_v29 = vadd.f32 -1.0, %v46_v23  ;;  %v52_v53 = vld [vmem:[#allocation3 + $0x70] sm:$0xff]  ;;  %v53_v58 = vld [vmem:[#allocation3 + $0x78] sm:$0xff]  ;;  %v54_v63 = vld [vmem:[#allocation3 + $0x80] sm:$0xff] }
  0x14   :  { %v424_v22 = vmul.f32 %v296_v13, %v296_v13  ;;  %v425_v26 = vmul.f32 %v297_v16, %v297_v16  ;;  %v300_v30 = vmul.f32 %v717_v20, %v717_v20  ;;  %v426_v31 = vmul.f32 %v298_v21, %v298_v21  ;;  %v55_v4 = vld [vmem:[#allocation3 + $0x88] sm:$0xff]  ;;  %v56_v9 = vld [vmem:[#allocation3 + $0x90] sm:$0xff]  ;;  %v57_v14 = vld [vmem:[#allocation3 + $0x98] sm:$0xff] }
  0x15   :  { %v551_v27 = vadd.f32 %v423_v18, %v422_v17  ;;  %v720_v34 = vadd.f32 -1.0, %v47_v28  ;;  %v301_v35 = vmul.f32 %v718_v24, %v718_v24  ;;  %v427_v36 = vmul.f32 %v299_v25, %v299_v25  ;;  %v58_v19 = vld [vmem:[#allocation3 + $0xa0] sm:$0xff]  ;;  %v59_v24 = vld [vmem:[#allocation3 + $0xa8] sm:$0xff] }
  0x16   :  { %v721_v39 = vadd.f32 -1.0, %v48_v33  ;;  %v302_v40 = vmul.f32 %v719_v29, %v719_v29  ;;  %v428_v41 = vmul.f32 %v300_v30, %v300_v30  ;;  %v722_v44 = vadd.f32 -1.0, %v49_v38  ;;  %v60_v29 = vld [vmem:[#allocation3 + $0xb0] sm:$0xff] }
  0x17   :  { %v552_v32 = vadd.f32 %v551_v27, %v424_v22  ;;  %v303_v45 = vmul.f32 %v720_v34, %v720_v34  ;;  %v429_v46 = vmul.f32 %v301_v35, %v301_v35  ;;  %v723_v49 = vadd.f32 -1.0, %v50_v43  ;;  %v61_v34 = vld [vmem:[#allocation3 + $0xb8] sm:$0xff] }
  0x18   :  { %v304_v50 = vmul.f32 %v721_v39, %v721_v39  ;;  %v430_v51 = vmul.f32 %v302_v40, %v302_v40  ;;  %v724_v54 = vadd.f32 -1.0, %v51_v48  ;;  %v305_v55 = vmul.f32 %v722_v44, %v722_v44  ;;  %v62_v39 = vld [vmem:[#allocation3 + $0xc0] sm:$0xff]  ;;  %v63_v44 = vld [vmem:[#allocation3 + $0xc8] sm:$0xff] }
  0x19   :  { %v553_v37 = vadd.f32 %v552_v32, %v425_v26  ;;  %v431_v56 = vmul.f32 %v303_v45, %v303_v45  ;;  %v725_v59 = vadd.f32 -1.0, %v52_v53  ;;  %v306_v60 = vmul.f32 %v723_v49, %v723_v49  ;;  %v64_v49 = vld [vmem:[#allocation3 + $0xd0] sm:$0xff] }
  0x1a   :  { %v432_v61 = vmul.f32 %v304_v50, %v304_v50  ;;  %v726_v0 = vadd.f32 -1.0, %v53_v58  ;;  %v307_v1 = vmul.f32 %v724_v54, %v724_v54  ;;  %v433_v2 = vmul.f32 %v305_v55, %v305_v55  ;;  %v65_v54 = vld [vmem:[#allocation3 + $0xd8] sm:$0xff] }
  0x1b   :  { %v554_v42 = vadd.f32 %v553_v37, %v426_v31  ;;  %v727_v5 = vadd.f32 -1.0, %v54_v63  ;;  %v308_v6 = vmul.f32 %v725_v59, %v725_v59  ;;  %v434_v7 = vmul.f32 %v306_v60, %v306_v60  ;;  %v66_v59 = vld [vmem:[#allocation3 + $0xe0] sm:$0xff] }
  0x1c   :  { %v728_v10 = vadd.f32 -1.0, %v55_v4  ;;  %v309_v11 = vmul.f32 %v726_v0, %v726_v0  ;;  %v435_v12 = vmul.f32 %v307_v1, %v307_v1  ;;  %v729_v15 = vadd.f32 -1.0, %v56_v9  ;;  %v67_v0 = vld [vmem:[#allocation3 + $0xe8] sm:$0xff] }
  0x1d   :  { %v555_v47 = vadd.f32 %v554_v42, %v427_v36  ;;  %v310_v16 = vmul.f32 %v727_v5, %v727_v5  ;;  %v436_v17 = vmul.f32 %v308_v6, %v308_v6  ;;  %v730_v20 = vadd.f32 -1.0, %v57_v14  ;;  %v68_v5 = vld [vmem:[#allocation3 + $0xf0] sm:$0xff] }
  0x1e   :  { %v311_v21 = vmul.f32 %v728_v10, %v728_v10  ;;  %v437_v22 = vmul.f32 %v309_v11, %v309_v11  ;;  %v731_v25 = vadd.f32 -1.0, %v58_v19  ;;  %v312_v26 = vmul.f32 %v729_v15, %v729_v15  ;;  %v69_v10 = vld [vmem:[#allocation3 + $0xf8] sm:$0xff]  ;;  %v70_v15 = vld [vmem:[#allocation3 + $0x100] sm:$0xff] }
  0x1f   :  { %v556_v52 = vadd.f32 %v555_v47, %v428_v41  ;;  %v438_v27 = vmul.f32 %v310_v16, %v310_v16  ;;  %v732_v30 = vadd.f32 -1.0, %v59_v24  ;;  %v313_v31 = vmul.f32 %v730_v20, %v730_v20  ;;  %v71_v20 = vld [vmem:[#allocation3 + $0x108] sm:$0xff] }
  0x20   :  { %v439_v32 = vmul.f32 %v311_v21, %v311_v21  ;;  %v733_v35 = vadd.f32 -1.0, %v60_v29  ;;  %v314_v36 = vmul.f32 %v731_v25, %v731_v25  ;;  %v440_v37 = vmul.f32 %v312_v26, %v312_v26  ;;  %v72_v25 = vld [vmem:[#allocation3 + $0x110] sm:$0xff] }
  0x21   :  { %v557_v57 = vadd.f32 %v556_v52, %v429_v46  ;;  %v734_v40 = vadd.f32 -1.0, %v61_v34  ;;  %v315_v41 = vmul.f32 %v732_v30, %v732_v30  ;;  %v441_v42 = vmul.f32 %v313_v31, %v313_v31  ;;  %v73_v30 = vld [vmem:[#allocation3 + $0x118] sm:$0xff] }
  0x22   :  { %v735_v45 = vadd.f32 -1.0, %v62_v39  ;;  %v316_v46 = vmul.f32 %v733_v35, %v733_v35  ;;  %v442_v47 = vmul.f32 %v314_v36, %v314_v36  ;;  %v736_v50 = vadd.f32 -1.0, %v63_v44  ;;  %v74_v35 = vld [vmem:[#allocation3 + $0x120] sm:$0xff] }
  0x23   :  { %v558_v62 = vadd.f32 %v557_v57, %v430_v51  ;;  %v317_v51 = vmul.f32 %v734_v40, %v734_v40  ;;  %v443_v52 = vmul.f32 %v315_v41, %v315_v41  ;;  %v737_v55 = vadd.f32 -1.0, %v64_v49  ;;  %v75_v40 = vld [vmem:[#allocation3 + $0x128] sm:$0xff] }
  0x24   :  { %v444_v57 = vmul.f32 %v316_v46, %v316_v46  ;;  %v738_v60 = vadd.f32 -1.0, %v65_v54  ;;  %v739_v1 = vadd.f32 -1.0, %v66_v59  ;;  %v740_v6 = vadd.f32 -1.0, %v67_v0 }
  0x25   :  { %v559_v3 = vadd.f32 %v558_v62, %v431_v56  ;;  %v318_v56 = vmul.f32 %v735_v45, %v735_v45  ;;  %v445_v62 = vmul.f32 %v317_v51, %v317_v51  ;;  %v741_v11 = vadd.f32 -1.0, %v68_v5  ;;  %v76_v45 = vld [vmem:[#allocation3 + $0x130] sm:$0xff] }
  0x26   :  { %v742_v16 = vadd.f32 -1.0, %v69_v10  ;;  %v743_v21 = vadd.f32 -1.0, %v70_v15  ;;  %v744_v26 = vadd.f32 -1.0, %v71_v20  ;;  %v745_v31 = vadd.f32 -1.0, %v72_v25 }
  0x27   :  { %v560_v8 = vadd.f32 %v559_v3, %v432_v61  ;;  %v319_v61 = vmul.f32 %v736_v50, %v736_v50  ;;  %v446_v3 = vmul.f32 %v318_v56, %v318_v56  ;;  %v746_v36 = vadd.f32 -1.0, %v73_v30  ;;  %v77_v50 = vld [vmem:[#allocation3 + $0x138] sm:$0xff] }
  0x28   :  { %v747_v41 = vadd.f32 -1.0, %v74_v35  ;;  %v748_v46 = vadd.f32 -1.0, %v75_v40  ;;  %v749_v51 = vadd.f32 -1.0, %v76_v45  ;;  %v750_v56 = vadd.f32 -1.0, %v77_v50 }
  0x29   :  { %v561_v13 = vadd.f32 %v560_v8, %v433_v2  ;;  %v320_v2 = vmul.f32 %v737_v55, %v737_v55  ;;  %v447_v8 = vmul.f32 %v319_v61, %v319_v61  ;;  %v78_v55 = vld [vmem:[#allocation3 + $0x140] sm:$0xff] }
  0x2a   :  { %v751_v61 = vadd.f32 -1.0, %v78_v55 }
  0x2b   :  { %v562_v18 = vadd.f32 %v561_v13, %v434_v7  ;;  %v321_v7 = vmul.f32 %v738_v60, %v738_v60  ;;  %v448_v13 = vmul.f32 %v320_v2, %v320_v2  ;;  %v79_v60 = vld [vmem:[#allocation3 + $0x148] sm:$0xff] }
  0x2c   :  { %v752_v2 = vadd.f32 -1.0, %v79_v60 }
  0x2d   :  { %v563_v23 = vadd.f32 %v562_v18, %v435_v12  ;;  %v322_v12 = vmul.f32 %v739_v1, %v739_v1  ;;  %v449_v18 = vmul.f32 %v321_v7, %v321_v7  ;;  %v80_v1 = vld [vmem:[#allocation3 + $0x150] sm:$0xff] }
  0x2e   :  { %v753_v7 = vadd.f32 -1.0, %v80_v1 }
  0x2f   :  { %v564_v28 = vadd.f32 %v563_v23, %v436_v17  ;;  %v323_v17 = vmul.f32 %v740_v6, %v740_v6  ;;  %v450_v23 = vmul.f32 %v322_v12, %v322_v12  ;;  %v81_v6 = vld [vmem:[#allocation3 + $0x158] sm:$0xff] }
  0x30   :  { %v754_v12 = vadd.f32 -1.0, %v81_v6 }
  0x31   :  { %v565_v33 = vadd.f32 %v564_v28, %v437_v22  ;;  %v324_v22 = vmul.f32 %v741_v11, %v741_v11  ;;  %v451_v28 = vmul.f32 %v323_v17, %v323_v17  ;;  %v82_v11 = vld [vmem:[#allocation3 + $0x160] sm:$0xff] }
  0x32   :  { %v755_v17 = vadd.f32 -1.0, %v82_v11 }
  0x33   :  { %v566_v38 = vadd.f32 %v565_v33, %v438_v27  ;;  %v325_v27 = vmul.f32 %v742_v16, %v742_v16  ;;  %v452_v33 = vmul.f32 %v324_v22, %v324_v22  ;;  %v83_v16 = vld [vmem:[#allocation3 + $0x168] sm:$0xff] }
  0x34   :  { %v756_v22 = vadd.f32 -1.0, %v83_v16 }
  0x35   :  { %v567_v43 = vadd.f32 %v566_v38, %v439_v32  ;;  %v326_v32 = vmul.f32 %v743_v21, %v743_v21  ;;  %v453_v38 = vmul.f32 %v325_v27, %v325_v27  ;;  %v84_v21 = vld [vmem:[#allocation3 + $0x170] sm:$0xff] }
  0x36   :  { %v757_v27 = vadd.f32 -1.0, %v84_v21 }
  0x37   :  { %v568_v48 = vadd.f32 %v567_v43, %v440_v37  ;;  %v327_v37 = vmul.f32 %v744_v26, %v744_v26  ;;  %v454_v43 = vmul.f32 %v326_v32, %v326_v32  ;;  %v85_v26 = vld [vmem:[#allocation3 + $0x178] sm:$0xff] }
  0x38   :  { %v758_v32 = vadd.f32 -1.0, %v85_v26 }
  0x39   :  { %v569_v53 = vadd.f32 %v568_v48, %v441_v42  ;;  %v328_v42 = vmul.f32 %v745_v31, %v745_v31  ;;  %v455_v48 = vmul.f32 %v327_v37, %v327_v37  ;;  %v86_v31 = vld [vmem:[#allocation3 + $0x180] sm:$0xff] }
  0x3a   :  { %v759_v37 = vadd.f32 -1.0, %v86_v31 }
  0x3b   :  { %v570_v58 = vadd.f32 %v569_v53, %v442_v47  ;;  %v329_v47 = vmul.f32 %v746_v36, %v746_v36  ;;  %v456_v53 = vmul.f32 %v328_v42, %v328_v42  ;;  %v87_v36 = vld [vmem:[#allocation3 + $0x188] sm:$0xff] }
  0x3c   :  { %v760_v42 = vadd.f32 -1.0, %v87_v36 }
  0x3d   :  { %v571_v63 = vadd.f32 %v570_v58, %v443_v52  ;;  %v330_v52 = vmul.f32 %v747_v41, %v747_v41  ;;  %v457_v58 = vmul.f32 %v329_v47, %v329_v47  ;;  %v88_v41 = vld [vmem:[#allocation3 + $0x190] sm:$0xff] }
  0x3e   :  { %v761_v47 = vadd.f32 -1.0, %v88_v41 }
  0x3f   :  { %v572_v4 = vadd.f32 %v571_v63, %v444_v57  ;;  %v331_v57 = vmul.f32 %v748_v46, %v748_v46  ;;  %v458_v63 = vmul.f32 %v330_v52, %v330_v52  ;;  %v89_v46 = vld [vmem:[#allocation3 + $0x198] sm:$0xff] }
  0x40   :  { %v762_v52 = vadd.f32 -1.0, %v89_v46 }
  0x41   :  { %v573_v9 = vadd.f32 %v572_v4, %v445_v62  ;;  %v332_v62 = vmul.f32 %v749_v51, %v749_v51  ;;  %v459_v4 = vmul.f32 %v331_v57, %v331_v57  ;;  %v90_v51 = vld [vmem:[#allocation3 + $0x1a0] sm:$0xff] }
  0x42   :  { %v763_v57 = vadd.f32 -1.0, %v90_v51 }
  0x43   :  { %v574_v14 = vadd.f32 %v573_v9, %v446_v3  ;;  %v333_v3 = vmul.f32 %v750_v56, %v750_v56  ;;  %v460_v9 = vmul.f32 %v332_v62, %v332_v62  ;;  %v91_v56 = vld [vmem:[#allocation3 + $0x1a8] sm:$0xff] }
  0x44   :  { %v764_v62 = vadd.f32 -1.0, %v91_v56 }
  0x45   :  { %v575_v19 = vadd.f32 %v574_v14, %v447_v8  ;;  %v334_v8 = vmul.f32 %v751_v61, %v751_v61  ;;  %v461_v14 = vmul.f32 %v333_v3, %v333_v3  ;;  %v92_v61 = vld [vmem:[#allocation3 + $0x1b0] sm:$0xff] }
  0x46   :  { %v765_v3 = vadd.f32 -1.0, %v92_v61 }
  0x47   :  { %v576_v24 = vadd.f32 %v575_v19, %v448_v13  ;;  %v335_v13 = vmul.f32 %v752_v2, %v752_v2  ;;  %v462_v19 = vmul.f32 %v334_v8, %v334_v8  ;;  %v93_v2 = vld [vmem:[#allocation3 + $0x1b8] sm:$0xff] }
  0x48   :  { %v766_v8 = vadd.f32 -1.0, %v93_v2 }
  0x49   :  { %v577_v29 = vadd.f32 %v576_v24, %v449_v18  ;;  %v336_v18 = vmul.f32 %v753_v7, %v753_v7  ;;  %v463_v24 = vmul.f32 %v335_v13, %v335_v13  ;;  %v94_v7 = vld [vmem:[#allocation3 + $0x1c0] sm:$0xff] }
  0x4a   :  { %v767_v13 = vadd.f32 -1.0, %v94_v7 }
  0x4b   :  { %v578_v34 = vadd.f32 %v577_v29, %v450_v23  ;;  %v337_v23 = vmul.f32 %v754_v12, %v754_v12  ;;  %v464_v29 = vmul.f32 %v336_v18, %v336_v18  ;;  %v95_v12 = vld [vmem:[#allocation3 + $0x1c8] sm:$0xff] }
  0x4c   :  { %v768_v18 = vadd.f32 -1.0, %v95_v12 }
  0x4d   :  { %v579_v39 = vadd.f32 %v578_v34, %v451_v28  ;;  %v338_v28 = vmul.f32 %v755_v17, %v755_v17  ;;  %v465_v34 = vmul.f32 %v337_v23, %v337_v23  ;;  %v96_v17 = vld [vmem:[#allocation3 + $0x1d0] sm:$0xff] }
  0x4e   :  { %v769_v23 = vadd.f32 -1.0, %v96_v17 }
  0x4f   :  { %v580_v44 = vadd.f32 %v579_v39, %v452_v33  ;;  %v339_v33 = vmul.f32 %v756_v22, %v756_v22  ;;  %v466_v39 = vmul.f32 %v338_v28, %v338_v28  ;;  %v97_v22 = vld [vmem:[#allocation3 + $0x1d8] sm:$0xff] }
  0x50   :  { %v770_v28 = vadd.f32 -1.0, %v97_v22 }
  0x51   :  { %v581_v49 = vadd.f32 %v580_v44, %v453_v38  ;;  %v340_v38 = vmul.f32 %v757_v27, %v757_v27  ;;  %v467_v44 = vmul.f32 %v339_v33, %v339_v33  ;;  %v98_v27 = vld [vmem:[#allocation3 + $0x1e0] sm:$0xff] }
  0x52   :  { %v771_v33 = vadd.f32 -1.0, %v98_v27 }
  0x53   :  { %v582_v54 = vadd.f32 %v581_v49, %v454_v43  ;;  %v341_v43 = vmul.f32 %v758_v32, %v758_v32  ;;  %v468_v49 = vmul.f32 %v340_v38, %v340_v38  ;;  %v99_v32 = vld [vmem:[#allocation3 + $0x1e8] sm:$0xff] }
  0x54   :  { %v772_v38 = vadd.f32 -1.0, %v99_v32 }
  0x55   :  { %v583_v59 = vadd.f32 %v582_v54, %v455_v48  ;;  %v342_v48 = vmul.f32 %v759_v37, %v759_v37  ;;  %v469_v54 = vmul.f32 %v341_v43, %v341_v43  ;;  %v100_v37 = vld [vmem:[#allocation3 + $0x1f0] sm:$0xff] }
  0x56   :  { %v773_v43 = vadd.f32 -1.0, %v100_v37 }
  0x57   :  { %v584_v0 = vadd.f32 %v583_v59, %v456_v53  ;;  %v343_v53 = vmul.f32 %v760_v42, %v760_v42  ;;  %v470_v59 = vmul.f32 %v342_v48, %v342_v48  ;;  %v101_v42 = vld [vmem:[#allocation3 + $0x1f8] sm:$0xff] }
  0x58   :  { %v774_v48 = vadd.f32 -1.0, %v101_v42 }
  0x59   :  { %v585_v5 = vadd.f32 %v584_v0, %v457_v58  ;;  %v344_v58 = vmul.f32 %v761_v47, %v761_v47  ;;  %v471_v0 = vmul.f32 %v343_v53, %v343_v53  ;;  %v102_v47 = vld [vmem:[#allocation3 + $0x200] sm:$0xff] }
  0x5a   :  { %v775_v53 = vadd.f32 -1.0, %v102_v47 }
  0x5b   :  { %v586_v10 = vadd.f32 %v585_v5, %v458_v63  ;;  %v345_v63 = vmul.f32 %v762_v52, %v762_v52  ;;  %v472_v5 = vmul.f32 %v344_v58, %v344_v58  ;;  %v103_v52 = vld [vmem:[#allocation3 + $0x208] sm:$0xff] }
  0x5c   :  { %v776_v58 = vadd.f32 -1.0, %v103_v52 }
  0x5d   :  { %v587_v15 = vadd.f32 %v586_v10, %v459_v4  ;;  %v346_v4 = vmul.f32 %v763_v57, %v763_v57  ;;  %v473_v10 = vmul.f32 %v345_v63, %v345_v63  ;;  %v104_v57 = vld [vmem:[#allocation3 + $0x210] sm:$0xff] }
  0x5e   :  { %v777_v63 = vadd.f32 -1.0, %v104_v57 }
  0x5f   :  { %v588_v20 = vadd.f32 %v587_v15, %v460_v9  ;;  %v347_v9 = vmul.f32 %v764_v62, %v764_v62  ;;  %v474_v15 = vmul.f32 %v346_v4, %v346_v4  ;;  %v105_v62 = vld [vmem:[#allocation3 + $0x218] sm:$0xff] }
  0x60   :  { %v778_v4 = vadd.f32 -1.0, %v105_v62 }
  0x61   :  { %v589_v25 = vadd.f32 %v588_v20, %v461_v14  ;;  %v348_v14 = vmul.f32 %v765_v3, %v765_v3  ;;  %v475_v20 = vmul.f32 %v347_v9, %v347_v9  ;;  %v106_v3 = vld [vmem:[#allocation3 + $0x220] sm:$0xff] }
  0x62   :  { %v779_v9 = vadd.f32 -1.0, %v106_v3 }
  0x63   :  { %v590_v30 = vadd.f32 %v589_v25, %v462_v19  ;;  %v349_v19 = vmul.f32 %v766_v8, %v766_v8  ;;  %v476_v25 = vmul.f32 %v348_v14, %v348_v14  ;;  %v107_v8 = vld [vmem:[#allocation3 + $0x228] sm:$0xff] }
  0x64   :  { %v780_v14 = vadd.f32 -1.0, %v107_v8 }
  0x65   :  { %v591_v35 = vadd.f32 %v590_v30, %v463_v24  ;;  %v350_v24 = vmul.f32 %v767_v13, %v767_v13  ;;  %v477_v30 = vmul.f32 %v349_v19, %v349_v19  ;;  %v108_v13 = vld [vmem:[#allocation3 + $0x230] sm:$0xff] }
  0x66   :  { %v781_v19 = vadd.f32 -1.0, %v108_v13 }
  0x67   :  { %v592_v40 = vadd.f32 %v591_v35, %v464_v29  ;;  %v351_v29 = vmul.f32 %v768_v18, %v768_v18  ;;  %v478_v35 = vmul.f32 %v350_v24, %v350_v24  ;;  %v109_v18 = vld [vmem:[#allocation3 + $0x238] sm:$0xff] }
  0x68   :  { %v782_v24 = vadd.f32 -1.0, %v109_v18 }
  0x69   :  { %v593_v45 = vadd.f32 %v592_v40, %v465_v34  ;;  %v352_v34 = vmul.f32 %v769_v23, %v769_v23  ;;  %v479_v40 = vmul.f32 %v351_v29, %v351_v29  ;;  %v110_v23 = vld [vmem:[#allocation3 + $0x240] sm:$0xff] }
  0x6a   :  { %v783_v29 = vadd.f32 -1.0, %v110_v23 }
  0x6b   :  { %v594_v50 = vadd.f32 %v593_v45, %v466_v39  ;;  %v353_v39 = vmul.f32 %v770_v28, %v770_v28  ;;  %v480_v45 = vmul.f32 %v352_v34, %v352_v34  ;;  %v111_v28 = vld [vmem:[#allocation3 + $0x248] sm:$0xff] }
  0x6c   :  { %v784_v34 = vadd.f32 -1.0, %v111_v28 }
  0x6d   :  { %v595_v55 = vadd.f32 %v594_v50, %v467_v44  ;;  %v354_v44 = vmul.f32 %v771_v33, %v771_v33  ;;  %v481_v50 = vmul.f32 %v353_v39, %v353_v39  ;;  %v112_v33 = vld [vmem:[#allocation3 + $0x250] sm:$0xff] }
  0x6e   :  { %v785_v39 = vadd.f32 -1.0, %v112_v33 }
  0x6f   :  { %v596_v60 = vadd.f32 %v595_v55, %v468_v49  ;;  %v355_v49 = vmul.f32 %v772_v38, %v772_v38  ;;  %v482_v55 = vmul.f32 %v354_v44, %v354_v44  ;;  %v113_v38 = vld [vmem:[#allocation3 + $0x258] sm:$0xff] }
  0x70   :  { %v786_v44 = vadd.f32 -1.0, %v113_v38 }
  0x71   :  { %v597_v1 = vadd.f32 %v596_v60, %v469_v54  ;;  %v356_v54 = vmul.f32 %v773_v43, %v773_v43  ;;  %v483_v60 = vmul.f32 %v355_v49, %v355_v49  ;;  %v114_v43 = vld [vmem:[#allocation3 + $0x260] sm:$0xff] }
  0x72   :  { %v787_v49 = vadd.f32 -1.0, %v114_v43 }
  0x73   :  { %v598_v6 = vadd.f32 %v597_v1, %v470_v59  ;;  %v357_v59 = vmul.f32 %v774_v48, %v774_v48  ;;  %v484_v1 = vmul.f32 %v356_v54, %v356_v54  ;;  %v115_v48 = vld [vmem:[#allocation3 + $0x268] sm:$0xff] }
  0x74   :  { %v788_v54 = vadd.f32 -1.0, %v115_v48 }
  0x75   :  { %v599_v11 = vadd.f32 %v598_v6, %v471_v0  ;;  %v358_v0 = vmul.f32 %v775_v53, %v775_v53  ;;  %v485_v6 = vmul.f32 %v357_v59, %v357_v59  ;;  %v116_v53 = vld [vmem:[#allocation3 + $0x270] sm:$0xff] }
  0x76   :  { %v789_v59 = vadd.f32 -1.0, %v116_v53 }
  0x77   :  { %v600_v16 = vadd.f32 %v599_v11, %v472_v5  ;;  %v359_v5 = vmul.f32 %v776_v58, %v776_v58  ;;  %v486_v11 = vmul.f32 %v358_v0, %v358_v0  ;;  %v117_v58 = vld [vmem:[#allocation3 + $0x278] sm:$0xff] }
  0x78   :  { %v790_v0 = vadd.f32 -1.0, %v117_v58 }
  0x79   :  { %v601_v21 = vadd.f32 %v600_v16, %v473_v10  ;;  %v360_v10 = vmul.f32 %v777_v63, %v777_v63  ;;  %v487_v16 = vmul.f32 %v359_v5, %v359_v5  ;;  %v118_v63 = vld [vmem:[#allocation3 + $0x280] sm:$0xff] }
  0x7a   :  { %v791_v5 = vadd.f32 -1.0, %v118_v63 }
  0x7b   :  { %v602_v26 = vadd.f32 %v601_v21, %v474_v15  ;;  %v361_v15 = vmul.f32 %v778_v4, %v778_v4  ;;  %v488_v21 = vmul.f32 %v360_v10, %v360_v10  ;;  %v119_v4 = vld [vmem:[#allocation3 + $0x288] sm:$0xff] }
  0x7c   :  { %v792_v10 = vadd.f32 -1.0, %v119_v4 }
  0x7d   :  { %v603_v31 = vadd.f32 %v602_v26, %v475_v20  ;;  %v362_v20 = vmul.f32 %v779_v9, %v779_v9  ;;  %v489_v26 = vmul.f32 %v361_v15, %v361_v15  ;;  %v120_v9 = vld [vmem:[#allocation3 + $0x290] sm:$0xff] }
  0x7e   :  { %v793_v15 = vadd.f32 -1.0, %v120_v9 }
  0x7f   :  { %v604_v36 = vadd.f32 %v603_v31, %v476_v25  ;;  %v363_v25 = vmul.f32 %v780_v14, %v780_v14  ;;  %v490_v31 = vmul.f32 %v362_v20, %v362_v20  ;;  %v121_v14 = vld [vmem:[#allocation3 + $0x298] sm:$0xff] }
  0x80   :  { %v794_v20 = vadd.f32 -1.0, %v121_v14 }
  0x81   :  { %v605_v41 = vadd.f32 %v604_v36, %v477_v30  ;;  %v364_v30 = vmul.f32 %v781_v19, %v781_v19  ;;  %v491_v36 = vmul.f32 %v363_v25, %v363_v25  ;;  %v122_v19 = vld [vmem:[#allocation3 + $0x2a0] sm:$0xff] }
  0x82   :  { %v795_v25 = vadd.f32 -1.0, %v122_v19 }
  0x83   :  { %v606_v46 = vadd.f32 %v605_v41, %v478_v35  ;;  %v365_v35 = vmul.f32 %v782_v24, %v782_v24  ;;  %v492_v41 = vmul.f32 %v364_v30, %v364_v30  ;;  %v123_v24 = vld [vmem:[#allocation3 + $0x2a8] sm:$0xff] }
  0x84   :  { %v796_v30 = vadd.f32 -1.0, %v123_v24 }
  0x85   :  { %v607_v51 = vadd.f32 %v606_v46, %v479_v40  ;;  %v366_v40 = vmul.f32 %v783_v29, %v783_v29  ;;  %v493_v46 = vmul.f32 %v365_v35, %v365_v35  ;;  %v124_v29 = vld [vmem:[#allocation3 + $0x2b0] sm:$0xff] }
  0x86   :  { %v797_v35 = vadd.f32 -1.0, %v124_v29 }
  0x87   :  { %v608_v56 = vadd.f32 %v607_v51, %v480_v45  ;;  %v367_v45 = vmul.f32 %v784_v34, %v784_v34  ;;  %v494_v51 = vmul.f32 %v366_v40, %v366_v40  ;;  %v125_v34 = vld [vmem:[#allocation3 + $0x2b8] sm:$0xff] }
  0x88   :  { %v798_v40 = vadd.f32 -1.0, %v125_v34 }
  0x89   :  { %v609_v61 = vadd.f32 %v608_v56, %v481_v50  ;;  %v368_v50 = vmul.f32 %v785_v39, %v785_v39  ;;  %v495_v56 = vmul.f32 %v367_v45, %v367_v45  ;;  %v126_v39 = vld [vmem:[#allocation3 + $0x2c0] sm:$0xff] }
  0x8a   :  { %v799_v45 = vadd.f32 -1.0, %v126_v39 }
  0x8b   :  { %v610_v2 = vadd.f32 %v609_v61, %v482_v55  ;;  %v369_v55 = vmul.f32 %v786_v44, %v786_v44  ;;  %v496_v61 = vmul.f32 %v368_v50, %v368_v50  ;;  %v127_v44 = vld [vmem:[#allocation3 + $0x2c8] sm:$0xff] }
  0x8c   :  { %v800_v50 = vadd.f32 -1.0, %v127_v44 }
  0x8d   :  { %v611_v7 = vadd.f32 %v610_v2, %v483_v60  ;;  %v370_v60 = vmul.f32 %v787_v49, %v787_v49  ;;  %v497_v2 = vmul.f32 %v369_v55, %v369_v55  ;;  %v128_v49 = vld [vmem:[#allocation3 + $0x2d0] sm:$0xff] }
  0x8e   :  { %v801_v55 = vadd.f32 -1.0, %v128_v49 }
  0x8f   :  { %v612_v12 = vadd.f32 %v611_v7, %v484_v1  ;;  %v371_v1 = vmul.f32 %v788_v54, %v788_v54  ;;  %v498_v7 = vmul.f32 %v370_v60, %v370_v60  ;;  %v129_v54 = vld [vmem:[#allocation3 + $0x2d8] sm:$0xff] }
  0x90   :  { %v802_v60 = vadd.f32 -1.0, %v129_v54 }
  0x91   :  { %v613_v17 = vadd.f32 %v612_v12, %v485_v6  ;;  %v372_v6 = vmul.f32 %v789_v59, %v789_v59  ;;  %v499_v12 = vmul.f32 %v371_v1, %v371_v1  ;;  %v130_v59 = vld [vmem:[#allocation3 + $0x2e0] sm:$0xff] }
  0x92   :  { %v803_v1 = vadd.f32 -1.0, %v130_v59 }
  0x93   :  { %v614_v22 = vadd.f32 %v613_v17, %v486_v11  ;;  %v373_v11 = vmul.f32 %v790_v0, %v790_v0  ;;  %v500_v17 = vmul.f32 %v372_v6, %v372_v6  ;;  %v131_v0 = vld [vmem:[#allocation3 + $0x2e8] sm:$0xff] }
  0x94   :  { %v804_v6 = vadd.f32 -1.0, %v131_v0 }
  0x95   :  { %v615_v27 = vadd.f32 %v614_v22, %v487_v16  ;;  %v374_v16 = vmul.f32 %v791_v5, %v791_v5  ;;  %v501_v22 = vmul.f32 %v373_v11, %v373_v11  ;;  %v132_v5 = vld [vmem:[#allocation3 + $0x2f0] sm:$0xff] }
  0x96   :  { %v805_v11 = vadd.f32 -1.0, %v132_v5 }
  0x97   :  { %v616_v32 = vadd.f32 %v615_v27, %v488_v21  ;;  %v375_v21 = vmul.f32 %v792_v10, %v792_v10  ;;  %v502_v27 = vmul.f32 %v374_v16, %v374_v16  ;;  %v133_v10 = vld [vmem:[#allocation3 + $0x2f8] sm:$0xff] }
  0x98   :  { %v806_v16 = vadd.f32 -1.0, %v133_v10 }
  0x99   :  { %v617_v37 = vadd.f32 %v616_v32, %v489_v26  ;;  %v376_v26 = vmul.f32 %v793_v15, %v793_v15  ;;  %v503_v32 = vmul.f32 %v375_v21, %v375_v21  ;;  %v134_v15 = vld [vmem:[#allocation3 + $0x300] sm:$0xff] }
  0x9a   :  { %v807_v21 = vadd.f32 -1.0, %v134_v15 }
  0x9b   :  { %v618_v42 = vadd.f32 %v617_v37, %v490_v31  ;;  %v377_v31 = vmul.f32 %v794_v20, %v794_v20  ;;  %v504_v37 = vmul.f32 %v376_v26, %v376_v26  ;;  %v135_v20 = vld [vmem:[#allocation3 + $0x308] sm:$0xff] }
  0x9c   :  { %v808_v26 = vadd.f32 -1.0, %v135_v20 }
  0x9d   :  { %v619_v47 = vadd.f32 %v618_v42, %v491_v36  ;;  %v378_v36 = vmul.f32 %v795_v25, %v795_v25  ;;  %v505_v42 = vmul.f32 %v377_v31, %v377_v31  ;;  %v136_v25 = vld [vmem:[#allocation3 + $0x310] sm:$0xff] }
  0x9e   :  { %v809_v31 = vadd.f32 -1.0, %v136_v25 }
  0x9f   :  { %v620_v52 = vadd.f32 %v619_v47, %v492_v41  ;;  %v379_v41 = vmul.f32 %v796_v30, %v796_v30  ;;  %v506_v47 = vmul.f32 %v378_v36, %v378_v36  ;;  %v137_v30 = vld [vmem:[#allocation3 + $0x318] sm:$0xff] }
  0xa0   :  { %v810_v36 = vadd.f32 -1.0, %v137_v30 }
  0xa1   :  { %v621_v57 = vadd.f32 %v620_v52, %v493_v46  ;;  %v380_v46 = vmul.f32 %v797_v35, %v797_v35  ;;  %v507_v52 = vmul.f32 %v379_v41, %v379_v41  ;;  %v138_v35 = vld [vmem:[#allocation3 + $0x320] sm:$0xff] }
  0xa2   :  { %v811_v41 = vadd.f32 -1.0, %v138_v35 }
  0xa3   :  { %v622_v62 = vadd.f32 %v621_v57, %v494_v51  ;;  %v381_v51 = vmul.f32 %v798_v40, %v798_v40  ;;  %v508_v57 = vmul.f32 %v380_v46, %v380_v46  ;;  %v139_v40 = vld [vmem:[#allocation3 + $0x328] sm:$0xff] }
  0xa4   :  { %v812_v46 = vadd.f32 -1.0, %v139_v40 }
  0xa5   :  { %v623_v3 = vadd.f32 %v622_v62, %v495_v56  ;;  %v382_v56 = vmul.f32 %v799_v45, %v799_v45  ;;  %v509_v62 = vmul.f32 %v381_v51, %v381_v51  ;;  %v140_v45 = vld [vmem:[#allocation3 + $0x330] sm:$0xff] }
  0xa6   :  { %v813_v51 = vadd.f32 -1.0, %v140_v45 }
  0xa7   :  { %v624_v8 = vadd.f32 %v623_v3, %v496_v61  ;;  %v383_v61 = vmul.f32 %v800_v50, %v800_v50  ;;  %v510_v3 = vmul.f32 %v382_v56, %v382_v56  ;;  %v141_v50 = vld [vmem:[#allocation3 + $0x338] sm:$0xff] }
  0xa8   :  { %v814_v56 = vadd.f32 -1.0, %v141_v50 }
  0xa9   :  { %v625_v13 = vadd.f32 %v624_v8, %v497_v2  ;;  %v384_v2 = vmul.f32 %v801_v55, %v801_v55  ;;  %v511_v8 = vmul.f32 %v383_v61, %v383_v61  ;;  %v142_v55 = vld [vmem:[#allocation3 + $0x340] sm:$0xff] }
  0xaa   :  { %v815_v61 = vadd.f32 -1.0, %v142_v55 }
  0xab   :  { %v626_v18 = vadd.f32 %v625_v13, %v498_v7  ;;  %v385_v7 = vmul.f32 %v802_v60, %v802_v60  ;;  %v512_v13 = vmul.f32 %v384_v2, %v384_v2  ;;  %v143_v60 = vld [vmem:[#allocation3 + $0x348] sm:$0xff] }
  0xac   :  { %v816_v2 = vadd.f32 -1.0, %v143_v60 }
  0xad   :  { %v627_v23 = vadd.f32 %v626_v18, %v499_v12  ;;  %v386_v12 = vmul.f32 %v803_v1, %v803_v1  ;;  %v513_v18 = vmul.f32 %v385_v7, %v385_v7  ;;  %v144_v1 = vld [vmem:[#allocation3 + $0x350] sm:$0xff] }
  0xae   :  { %v817_v7 = vadd.f32 -1.0, %v144_v1 }
  0xaf   :  { %v628_v28 = vadd.f32 %v627_v23, %v500_v17  ;;  %v387_v17 = vmul.f32 %v804_v6, %v804_v6  ;;  %v514_v23 = vmul.f32 %v386_v12, %v386_v12  ;;  %v145_v6 = vld [vmem:[#allocation3 + $0x358] sm:$0xff] }
  0xb0   :  { %v818_v12 = vadd.f32 -1.0, %v145_v6 }
  0xb1   :  { %v629_v33 = vadd.f32 %v628_v28, %v501_v22  ;;  %v388_v22 = vmul.f32 %v805_v11, %v805_v11  ;;  %v515_v28 = vmul.f32 %v387_v17, %v387_v17  ;;  %v146_v11 = vld [vmem:[#allocation3 + $0x360] sm:$0xff] }
  0xb2   :  { %v819_v17 = vadd.f32 -1.0, %v146_v11 }
  0xb3   :  { %v630_v38 = vadd.f32 %v629_v33, %v502_v27  ;;  %v389_v27 = vmul.f32 %v806_v16, %v806_v16  ;;  %v516_v33 = vmul.f32 %v388_v22, %v388_v22  ;;  %v147_v16 = vld [vmem:[#allocation3 + $0x368] sm:$0xff] }
  0xb4   :  { %v820_v22 = vadd.f32 -1.0, %v147_v16 }
  0xb5   :  { %v631_v43 = vadd.f32 %v630_v38, %v503_v32  ;;  %v390_v32 = vmul.f32 %v807_v21, %v807_v21  ;;  %v517_v38 = vmul.f32 %v389_v27, %v389_v27  ;;  %v148_v21 = vld [vmem:[#allocation3 + $0x370] sm:$0xff] }
  0xb6   :  { %v821_v27 = vadd.f32 -1.0, %v148_v21 }
  0xb7   :  { %v632_v48 = vadd.f32 %v631_v43, %v504_v37  ;;  %v391_v37 = vmul.f32 %v808_v26, %v808_v26  ;;  %v518_v43 = vmul.f32 %v390_v32, %v390_v32  ;;  %v149_v26 = vld [vmem:[#allocation3 + $0x378] sm:$0xff] }
  0xb8   :  { %v822_v32 = vadd.f32 -1.0, %v149_v26 }
  0xb9   :  { %v633_v53 = vadd.f32 %v632_v48, %v505_v42  ;;  %v392_v42 = vmul.f32 %v809_v31, %v809_v31  ;;  %v519_v48 = vmul.f32 %v391_v37, %v391_v37  ;;  %v150_v31 = vld [vmem:[#allocation3 + $0x380] sm:$0xff] }
  0xba   :  { %v823_v37 = vadd.f32 -1.0, %v150_v31 }
  0xbb   :  { %v634_v58 = vadd.f32 %v633_v53, %v506_v47  ;;  %v393_v47 = vmul.f32 %v810_v36, %v810_v36  ;;  %v520_v53 = vmul.f32 %v392_v42, %v392_v42  ;;  %v151_v36 = vld [vmem:[#allocation3 + $0x388] sm:$0xff] }
  0xbc   :  { %v824_v42 = vadd.f32 -1.0, %v151_v36 }
  0xbd   :  { %v635_v63 = vadd.f32 %v634_v58, %v507_v52  ;;  %v394_v52 = vmul.f32 %v811_v41, %v811_v41  ;;  %v521_v58 = vmul.f32 %v393_v47, %v393_v47  ;;  %v152_v41 = vld [vmem:[#allocation3 + $0x390] sm:$0xff] }
  0xbe   :  { %v825_v47 = vadd.f32 -1.0, %v152_v41 }
  0xbf   :  { %v636_v4 = vadd.f32 %v635_v63, %v508_v57  ;;  %v395_v57 = vmul.f32 %v812_v46, %v812_v46  ;;  %v522_v63 = vmul.f32 %v394_v52, %v394_v52  ;;  %v153_v46 = vld [vmem:[#allocation3 + $0x398] sm:$0xff] }
  0xc0   :  { %v826_v52 = vadd.f32 -1.0, %v153_v46 }
  0xc1   :  { %v637_v9 = vadd.f32 %v636_v4, %v509_v62  ;;  %v396_v62 = vmul.f32 %v813_v51, %v813_v51  ;;  %v523_v4 = vmul.f32 %v395_v57, %v395_v57  ;;  %v154_v51 = vld [vmem:[#allocation3 + $0x3a0] sm:$0xff] }
  0xc2   :  { %v827_v57 = vadd.f32 -1.0, %v154_v51 }
  0xc3   :  { %v638_v14 = vadd.f32 %v637_v9, %v510_v3  ;;  %v397_v3 = vmul.f32 %v814_v56, %v814_v56  ;;  %v524_v9 = vmul.f32 %v396_v62, %v396_v62  ;;  %v155_v56 = vld [vmem:[#allocation3 + $0x3a8] sm:$0xff] }
  0xc4   :  { %v828_v62 = vadd.f32 -1.0, %v155_v56 }
  0xc5   :  { %v639_v19 = vadd.f32 %v638_v14, %v511_v8  ;;  %v398_v8 = vmul.f32 %v815_v61, %v815_v61  ;;  %v525_v14 = vmul.f32 %v397_v3, %v397_v3  ;;  %v156_v61 = vld [vmem:[#allocation3 + $0x3b0] sm:$0xff] }
  0xc6   :  { %v829_v3 = vadd.f32 -1.0, %v156_v61 }
  0xc7   :  { %v640_v24 = vadd.f32 %v639_v19, %v512_v13  ;;  %v399_v13 = vmul.f32 %v816_v2, %v816_v2  ;;  %v526_v19 = vmul.f32 %v398_v8, %v398_v8  ;;  %v157_v2 = vld [vmem:[#allocation3 + $0x3b8] sm:$0xff] }
  0xc8   :  { %v830_v8 = vadd.f32 -1.0, %v157_v2 }
  0xc9   :  { %v641_v29 = vadd.f32 %v640_v24, %v513_v18  ;;  %v400_v18 = vmul.f32 %v817_v7, %v817_v7  ;;  %v527_v24 = vmul.f32 %v399_v13, %v399_v13  ;;  %v158_v7 = vld [vmem:[#allocation3 + $0x3c0] sm:$0xff] }
  0xca   :  { %v831_v13 = vadd.f32 -1.0, %v158_v7 }
  0xcb   :  { %v642_v34 = vadd.f32 %v641_v29, %v514_v23  ;;  %v401_v23 = vmul.f32 %v818_v12, %v818_v12  ;;  %v528_v29 = vmul.f32 %v400_v18, %v400_v18  ;;  %v159_v12 = vld [vmem:[#allocation3 + $0x3c8] sm:$0xff] }
  0xcc   :  { %v832_v18 = vadd.f32 -1.0, %v159_v12 }
  0xcd   :  { %v643_v39 = vadd.f32 %v642_v34, %v515_v28  ;;  %v402_v28 = vmul.f32 %v819_v17, %v819_v17  ;;  %v529_v34 = vmul.f32 %v401_v23, %v401_v23  ;;  %v160_v17 = vld [vmem:[#allocation3 + $0x3d0] sm:$0xff] }
  0xce   :  { %v833_v23 = vadd.f32 -1.0, %v160_v17 }
  0xcf   :  { %v644_v44 = vadd.f32 %v643_v39, %v516_v33  ;;  %v403_v33 = vmul.f32 %v820_v22, %v820_v22  ;;  %v530_v39 = vmul.f32 %v402_v28, %v402_v28  ;;  %v161_v22 = vld [vmem:[#allocation3 + $0x3d8] sm:$0xff] }
  0xd0   :  { %v834_v28 = vadd.f32 -1.0, %v161_v22 }
  0xd1   :  { %v645_v49 = vadd.f32 %v644_v44, %v517_v38  ;;  %v404_v38 = vmul.f32 %v821_v27, %v821_v27  ;;  %v531_v44 = vmul.f32 %v403_v33, %v403_v33  ;;  %v162_v27 = vld [vmem:[#allocation3 + $0x3e0] sm:$0xff] }
  0xd2   :  { %v835_v33 = vadd.f32 -1.0, %v162_v27 }
  0xd3   :  { %v646_v54 = vadd.f32 %v645_v49, %v518_v43  ;;  %v405_v43 = vmul.f32 %v822_v32, %v822_v32  ;;  %v532_v49 = vmul.f32 %v404_v38, %v404_v38  ;;  %v163_v32 = vld [vmem:[#allocation3 + $0x3e8] sm:$0xff] }
  0xd4   :  { %v836_v38 = vadd.f32 -1.0, %v163_v32 }
  0xd5   :  { %v647_v59 = vadd.f32 %v646_v54, %v519_v48  ;;  %v406_v48 = vmul.f32 %v823_v37, %v823_v37  ;;  %v533_v54 = vmul.f32 %v405_v43, %v405_v43  ;;  %v164_v37 = vld [vmem:[#allocation3 + $0x3f0] sm:$0xff] }
  0xd6   :  { %v837_v43 = vadd.f32 -1.0, %v164_v37 }
  0xd7   :  { %v648_v0 = vadd.f32 %v647_v59, %v520_v53  ;;  %v407_v53 = vmul.f32 %v824_v42, %v824_v42  ;;  %v534_v59 = vmul.f32 %v406_v48, %v406_v48  ;;  %v165_v42 = vld [vmem:[#allocation3 + $0x3f8] sm:$0xff]  ;;  %v419_v48 = vmul.f32 %v836_v38, %v836_v38 }
  0xd8   :  { %v420_v51 = vmul.f32 %v837_v43, %v837_v43 }
  0xd9   :  { %v649_v5 = vadd.f32 %v648_v0, %v521_v58  ;;  %v408_v58 = vmul.f32 %v825_v47, %v825_v47  ;;  %v535_v0 = vmul.f32 %v407_v53, %v407_v53  ;;  %v838_v47 = vadd.f32 -1.0, %v165_v42 }
  0xdb   :  { %v650_v10 = vadd.f32 %v649_v5, %v522_v63  ;;  %v409_v63 = vmul.f32 %v826_v52, %v826_v52  ;;  %v536_v5 = vmul.f32 %v408_v58, %v408_v58 }
  0xdd   :  { %v651_v15 = vadd.f32 %v650_v10, %v523_v4  ;;  %v410_v4 = vmul.f32 %v827_v57, %v827_v57  ;;  %v537_v10 = vmul.f32 %v409_v63, %v409_v63  ;;  %v548_v57 = vmul.f32 %v420_v51, %v420_v51 }
  0xdf   :  { %v652_v20 = vadd.f32 %v651_v15, %v524_v9  ;;  %v411_v9 = vmul.f32 %v828_v62, %v828_v62  ;;  %v538_v15 = vmul.f32 %v410_v4, %v410_v4 }
  0xe1   :  { %v653_v25 = vadd.f32 %v652_v20, %v525_v14  ;;  %v412_v14 = vmul.f32 %v829_v3, %v829_v3  ;;  %v539_v20 = vmul.f32 %v411_v9, %v411_v9 }
  0xe3   :  { %v654_v30 = vadd.f32 %v653_v25, %v526_v19  ;;  %v413_v19 = vmul.f32 %v830_v8, %v830_v8  ;;  %v540_v25 = vmul.f32 %v412_v14, %v412_v14 }
  0xe5   :  { %v655_v35 = vadd.f32 %v654_v30, %v527_v24  ;;  %v414_v24 = vmul.f32 %v831_v13, %v831_v13  ;;  %v541_v30 = vmul.f32 %v413_v19, %v413_v19 }
  0xe7   :  { %v656_v40 = vadd.f32 %v655_v35, %v528_v29  ;;  %v415_v29 = vmul.f32 %v832_v18, %v832_v18  ;;  %v542_v35 = vmul.f32 %v414_v24, %v414_v24 }
  0xe9   :  { %v657_v45 = vadd.f32 %v656_v40, %v529_v34  ;;  %v416_v34 = vmul.f32 %v833_v23, %v833_v23  ;;  %v543_v40 = vmul.f32 %v415_v29, %v415_v29 }
  0xeb   :  { %v658_v50 = vadd.f32 %v657_v45, %v530_v39  ;;  %v417_v39 = vmul.f32 %v834_v28, %v834_v28  ;;  %v544_v45 = vmul.f32 %v416_v34, %v416_v34 }
  0xed   :  { %v659_v55 = vadd.f32 %v658_v50, %v531_v44  ;;  %v418_v44 = vmul.f32 %v835_v33, %v835_v33 }
  0xef   :  { %v660_v60 = vadd.f32 %v659_v55, %v532_v49  ;;  %v545_v49 = vmul.f32 %v417_v39, %v417_v39  ;;  %v546_v52 = vmul.f32 %v418_v44, %v418_v44  ;;  %v547_v55 = vmul.f32 %v419_v48, %v419_v48 }
  0xf1   :  { %v661_v1 = vadd.f32 %v660_v60, %v533_v54  ;;  %v421_v54 = vmul.f32 %v838_v47, %v838_v47 }
  0xf3   :  { %v662_v6 = vadd.f32 %v661_v1, %v534_v59  ;;  %v549_v59 = vmul.f32 %v421_v54, %v421_v54 }
  0xf5   :  { %v663_v11 = vadd.f32 %v662_v6, %v535_v0 }
  0xf7   :  { %v664_v16 = vadd.f32 %v663_v11, %v536_v5 }
  0xf9   :  { %v665_v21 = vadd.f32 %v664_v16, %v537_v10 }
  0xfb   :  { %v666_v26 = vadd.f32 %v665_v21, %v538_v15 }
  0xfd   :  { %v667_v31 = vadd.f32 %v666_v26, %v539_v20 }
  0xff   :  { %v668_v36 = vadd.f32 %v667_v31, %v540_v25 }
 0x101   :  { %v669_v41 = vadd.f32 %v668_v36, %v541_v30 }
 0x103   :  { %v670_v46 = vadd.f32 %v669_v41, %v542_v35 }
 0x105   :  { %v671_v50 = vadd.f32 %v670_v46, %v543_v40 }
 0x107   :  { %v672_v53 = vadd.f32 %v671_v50, %v544_v45 }
 0x109   :  { %v673_v56 = vadd.f32 %v672_v53, %v545_v49 }
 0x10b   :  { %v674_v58 = vadd.f32 %v673_v56, %v546_v52 }
 0x10d   :  { %v675_v60 = vadd.f32 %v674_v58, %v547_v55 }
 0x10f   :  { %v676_v61 = vadd.f32 %v675_v60, %v548_v57 }
 0x111   :  { %v677_v62 = vadd.f32 %v676_v61, %v549_v59 }
 0x113   :  { %684 = vadd.xlane.f32.xlu0 %v677_v62 }
 0x19c   :  { %v685_v63 = vpop.xlane.xlu0 %684 }
 0x19d   :  { %v686_v0 = vrot.slane %v685_v63, 4 }
 0x19f   :  { %v687_v1 = vadd.f32 %v686_v0, %v685_v63 }
 0x1a1   :  { %v688_v2 = vrot.slane %v687_v1, 2 }
 0x1a3   :  { %v689_v3 = vadd.f32 %v688_v2, %v687_v1 }
 0x1a5   :  { %v690_v4 = vrot.slane %v689_v3, 1 }
 0x1a7   :  { %v691_v5 = vadd.f32 %v690_v4, %v689_v3 }
 0x1a9   :  { %839 = vpush %v691_v5 }
 0x1da   :  { %s840_s0 = spop %839 }
 0x1db   :  { %694 = sst [smem:[#allocation6]] %s840_s0 }
 0x1dc   :  { %702 = dma.smem_to_hbm %s880_s13, 16, %s898_s1, [#allocation5]  }
 0x1dd   :  { %875 = dma.done.wait [#allocation5], 16  }
 0x1de   :  { %876 = vsyncadd [#allocation5], 4294967280 }
 0x1df   :  { %706 = sfence }
 0x1e0   :  { %707 = vsyncpa [#allocation4], 1 }
 0x1e1   :  { %708 = vsyncpa [#allocation5], 1 }

</bundles_post_ra>
